<compile_context>
chip_gen: v7x
topology: tpu7x:2x2x1
jax: 0.10.0
libtpu: 0.0.40
codegen_flags: <defaults>
</compile_context>

<pallas_src>
import jax
import jax.numpy as jnp
from jax.experimental import pallas as pl
from jax.experimental.pallas import tpu as pltpu


def _round_up(x, m):
    return (x + m - 1) // m * m


def _tensorcores_per_chip():
    # v5e/v6e: 1 TensorCore per chip; v7x: 2. Gate the 2-way tile split on it.
    try:
        dev = jax.devices()[0]
        if dev.platform != "tpu":
            return 1
        kind = (getattr(dev, "device_kind", "") or "").lower()
        if "7" in kind:
            return 2
    except Exception:
        pass
    return 1


def _halfconv_kernel(x_ref, w_ref, b_ref, o_ref):
    # x_ref: (HK*Cin, TM) im2col tile, rows on lanes (dense 128-lane loads)
    # w_ref: (Cout, HK*Cin)   b_ref: (Cout, 1)   o_ref: (Cout, TM) lane-dense
    acc = jnp.dot(w_ref[...], x_ref[...], preferred_element_type=jnp.float32)
    o_ref[...] = (acc + b_ref[...]).astype(o_ref.dtype)


def halfconv1d_pallas(x_ncl, w_half, bias=None, *, stride=1, padding=0,
                      dilation=1, tm_max=2048):
    """halfConv1d forward.

    x_ncl : (N, Cin, L)  float32, PyTorch NCL layout
    w_half: (Cout, Cin, HK) learnable half-kernel, HK = kernel_size//2 + 1
    bias  : (Cout,) or None
    """
    assert stride == 1, "only stride=1 implemented (module default)"
    assert isinstance(padding, int), "only integer padding implemented"

    N, Cin, L = x_ncl.shape
    Cout, Cin_w, HK = w_half.shape
    assert Cin_w == Cin
    HKC = HK * Cin

    k_full = 2 * HK - 1                        # learnable + zero taps
    L_out = L + 2 * padding - dilation * (k_full - 1)
    assert L_out > 0
    halo = (HK - 1) * dilation
    R = L_out + halo                           # per-batch segment (<= L + 2p)

    # ---- JAX glue: zero-pad, per-tap shifted views stacked on sublanes ----
    x = x_ncl.astype(jnp.float32)
    pad_right = max(0, R - (L + padding))
    x_seg = jnp.pad(x, ((0, 0), (0, 0), (padding, pad_right)))[:, :, :R]
    x_ext = jnp.pad(x_seg, ((0, 0), (0, 0), (0, halo)))     # (N, Cin, R+halo)

    taps = [x_ext[:, :, j * dilation: j * dilation + R] for j in range(HK)]
    x_im = jnp.stack(taps, axis=0)                          # (HK, N, Cin, R)
    x_im = jnp.transpose(x_im, (0, 2, 1, 3)).reshape(HKC, N * R)

    # Row (lane) tiling: big tiles amortize per-step overhead; split only on
    # 2-TensorCore chips (v7x) so both cores get a grid step.
    M_rows = N * R
    TM = min(tm_max, _round_up(M_rows, 128))
    if _tensorcores_per_chip() >= 2 and M_rows > 128 and TM >= M_rows:
        TM = _round_up((M_rows + 1) // 2, 128)
    M_out = _round_up(M_rows, TM)
    x_im = jnp.pad(x_im, ((0, 0), (0, M_out - M_rows)))

    # im2col-fused weight (Cout, HK*Cin), column j*Cin+ci = w_half[:, ci, j].
    w_flat = jnp.transpose(w_half, (0, 2, 1)).reshape(Cout, HKC)
    w_flat = w_flat.astype(jnp.float32)
    if bias is None:
        bias = jnp.zeros((Cout,), jnp.float32)
    b2d = bias.reshape(Cout, 1).astype(jnp.float32)

    grid = (M_out // TM,)

    # Explicit VMEM budget: double-buffered in/out tiles + weights + headroom.
    blk_bytes = 2 * (HKC + Cout) * TM * 4 + (Cout * HKC + Cout) * 4
    vmem_limit = int(min(max(4 * blk_bytes, 4 << 20), 48 << 20))

    out_flat = pl.pallas_call(
        _halfconv_kernel,
        out_shape=jax.ShapeDtypeStruct((Cout, M_out), jnp.float32),
        grid_spec=pltpu.PrefetchScalarGridSpec(
            num_scalar_prefetch=0,
            grid=grid,
            in_specs=[
                pl.BlockSpec((HKC, TM), lambda i: (0, i)),
                pl.BlockSpec((Cout, HKC), lambda i: (0, 0)),
                pl.BlockSpec((Cout, 1), lambda i: (0, 0)),
            ],
            out_specs=pl.BlockSpec((Cout, TM), lambda i: (0, i)),
        ),
        compiler_params=pltpu.CompilerParams(
            dimension_semantics=("parallel",),
            vmem_limit_bytes=vmem_limit),
    )(x_im, w_flat, b2d)

    # (Cout, M_out) -> (N, Cout, L_out); lane axis stays last (cheap permute).
    out = out_flat[:, :M_rows].reshape(Cout, N, R)[:, :, :L_out]
    return jnp.transpose(out, (1, 0, 2))


def ref_halfconv1d(x_ncl, w_half, bias, *, stride=1, padding=0, dilation=1):
    """Pure-JAX reference matching the PyTorch halfConv1d.forward exactly."""
    Cout, Cin, HK = w_half.shape
    full_w = jnp.concatenate(
        [w_half, jnp.zeros((Cout, Cin, HK - 1), w_half.dtype)], axis=-1)
    out = jax.lax.conv_general_dilated(
        x_ncl, full_w, window_strides=(stride,),
        padding=[(padding, padding)], rhs_dilation=(dilation,),
        dimension_numbers=("NCH", "OIH", "NCH"))
    if bias is not None:
        out = out + bias[None, :, None]
    return out


if __name__ == "__main__":
    # Small shapes consistent with the module (defaults: stride=1, groups=1,
    # padding_mode='zeros', bias=True).
    N, Cin, Cout, L = 2, 4, 8, 16
    kernel_size, stride, padding, dilation = 3, 1, 1, 1
    hk = kernel_size // 2 + 1              # learnable half-kernel taps = 2

    key = jax.random.PRNGKey(0)
    kx, kw, kb = jax.random.split(key, 3)
    x_ncl = jax.random.normal(kx, (N, Cin, L), jnp.float32)
    w_half = jax.random.normal(kw, (Cout, Cin, hk), jnp.float32) * 0.3
    bias = jax.random.normal(kb, (Cout,), jnp.float32) * 0.1

    out = halfconv1d_pallas(x_ncl, w_half, bias,
                            stride=stride, padding=padding, dilation=dilation)
    out = jax.block_until_ready(out)

    ref = ref_halfconv1d(x_ncl, w_half, bias,
                         stride=stride, padding=padding, dilation=dilation)

    assert out.shape == ref.shape, (out.shape, ref.shape)
    assert jnp.allclose(out, ref, atol=1e-4, rtol=1e-4), (
        float(jnp.max(jnp.abs(out - ref))))
    print("KERNEL_OK")
</pallas_src>

<mosaic_0001>
module attributes {stable_mosaic.version = 11 : i64} {
  func.func @_halfconv_kernel(%arg0: i32, %arg1: memref<8x128xf32, #tpu.memory_space<vmem>>, %arg2: memref<8x8xf32, #tpu.memory_space<vmem>>, %arg3: memref<8x1xf32, #tpu.memory_space<vmem>>, %arg4: memref<8x128xf32, #tpu.memory_space<vmem>>) attributes {dimension_semantics = [#tpu.dimension_semantics<parallel>], iteration_bounds = array<i64: 1>, scalar_prefetch = 0 : i64, scratch_operands = 0 : i64, tpu.core_type = #tpu.core_type<tc>, window_params = [{transform_indices = @transform_0, window_bounds = array<i64: 8, 128>}, {pipeline_mode = #tpu.pipeline_mode<synchronous>, transform_indices = @transform_1, window_bounds = array<i64: 8, 8>}, {pipeline_mode = #tpu.pipeline_mode<synchronous>, transform_indices = @transform_2, window_bounds = array<i64: 8, 1>}, {transform_indices = @transform_3, window_bounds = array<i64: 8, 128>}]} {
    %c0 = arith.constant 0 : index
    %c0_0 = arith.constant 0 : index
    %0 = vector.load %arg2[%c0, %c0_0] : memref<8x8xf32, #tpu.memory_space<vmem>>, vector<8x8xf32>
    %c0_1 = arith.constant 0 : index
    %c0_2 = arith.constant 0 : index
    %1 = vector.load %arg1[%c0_1, %c0_2] : memref<8x128xf32, #tpu.memory_space<vmem>>, vector<8x128xf32>
    %cst = arith.constant dense<0.000000e+00> : vector<8x128xf32>
    %2 = tpu.matmul %0, %1, %cst {dimension_numbers = #tpu.dot_dimension_numbers<[1], [0], [0], [1], [0, 0, 1, 1], [], []>} : vector<8x8xf32>, vector<8x128xf32>, vector<8x128xf32> -> vector<8x128xf32>
    %c0_3 = arith.constant 0 : index
    %c0_4 = arith.constant 0 : index
    %3 = vector.load %arg3[%c0_3, %c0_4] : memref<8x1xf32, #tpu.memory_space<vmem>>, vector<8x1xf32>
    %4 = vector.broadcast %3 : vector<8x1xf32> to vector<8x128xf32>
    %5 = arith.addf %2, %4 : vector<8x128xf32>
    %c0_5 = arith.constant 0 : index
    %c0_6 = arith.constant 0 : index
    %6 = vector.load %arg4[%c0_5, %c0_6] : memref<8x128xf32, #tpu.memory_space<vmem>>, vector<8x128xf32>
    tpu.vector_store %arg4[%c0_5, %c0_6], %5 {strides = array<i32>} : memref<8x128xf32, #tpu.memory_space<vmem>>, vector<8x128xf32>,
    return
  }
  func.func @transform_0(%arg0: i32) -> (i32, i32) {
    %c0_i32 = arith.constant 0 : i32
    %c0_i32_0 = arith.constant 0 : i32
    return %c0_i32, %arg0 : i32, i32
  }
  func.func @transform_1(%arg0: i32) -> (i32, i32) {
    %c0_i32 = arith.constant 0 : i32
    %c0_i32_0 = arith.constant 0 : i32
    %c0_i32_1 = arith.constant 0 : i32
    return %c0_i32, %c0_i32_0 : i32, i32
  }
  func.func @transform_2(%arg0: i32) -> (i32, i32) {
    %c0_i32 = arith.constant 0 : i32
    %c0_i32_0 = arith.constant 0 : i32
    %c0_i32_1 = arith.constant 0 : i32
    return %c0_i32, %c0_i32_0 : i32, i32
  }
  func.func @transform_3(%arg0: i32) -> (i32, i32) {
    %c0_i32 = arith.constant 0 : i32
    %c0_i32_0 = arith.constant 0 : i32
    return %c0_i32, %arg0 : i32, i32
  }
}

</mosaic_0001>

<bundles_post_ra>
// kernel: tpu_custom_call.1
= control target key start
LH: loop header
LB: loop body
LE: loop exit
PB: predicated region body
PF: predicated region fallthrough
CT: control target
= control target key end

     0   :  { %8 = vsyncpa [#allocation3], 0  ;;  %s242_s0 = inlined_call_operand.vmem [shape: f32[8,128], index: 0, kind: input, shape index: {}]   ;;  %s243_s1 = inlined_call_operand.hbm [shape: f32[8,8], index: 1, kind: input, shape index: {}]   ;;  %s244_s2 = inlined_call_operand.vmem [shape: f32[8,1], index: 2, kind: input, shape index: {}]   ;;  %s245_s3 = inlined_call_operand.hbm [shape: f32[8,128], index: 3, kind: output, shape index: {}]  }
   0x1   :  { %9 = vsyncpa [#allocation4], 0  ;;  %s187_s12 = smov [#allocation2]   ;;  %s139_s16 = scalar_lea.hbm %s243_s1, 128 }
   0x2   :  { %s18_s13 = sshll.u32 %s187_s12, 4  ;;  %p140_p0 = scmp.ne.s32.totalorder %s243_s1, %s139_s16  ;;  %s19_s13 = int_to_ptr.vmem [resolvable:$true] %s18_s13 }
   0x3   :  { %p143_p1 = scmp.lt.u32.totalorder %s139_s16, %s243_s1 }
   0x5   :  { %p145_p2 = pnand %p143_p1, %p140_p0 }
   0x7   :  { %148 = shalt.err (!%p145_p2)
}
   0x8   :  { %s149_s21 = scalar_lea.vmem %s19_s13, 128  ;;  %p154_p4 = scmp.lt.s32.totalorder %s19_s13, %s19_s13 }
   0x9   :  { %p150_p3 = scmp.ne.s32.totalorder %s19_s13, %s149_s21  ;;  %p155_p5 = scmp.lt.s32.totalorder %s149_s21, %s149_s21 }
   0xb   :  { %p156_p6 = por %p155_p5, %p154_p4 }
   0xd   :  { %p157_p7 = pnand %p156_p6, %p150_p3 }
   0xf   :  { %160 = shalt.err (!%p157_p7)
}
  0x10   :  { %21 = dma.hbm_to_vmem [thread:$0]  %s243_s1, 128, %s19_s13, [#allocation3]  }
  0x11   :  { %183 = dma.done.wait [#allocation3], 128  }
  0x12   :  { %184 = vsyncadd [#allocation3], 4294967168  ;;  %v188_v0 = vmov 0.0   ;;  %vm189_vm0 = vmmov 0   ;;  %v190_v1 = vmov 0   ;;  %vm35_vm1 = vcmask 64512  }
  0x13   :  { %128 = vmatprep.subr.mxu0 %v188_v0  ;;  %130 = vmatprep.mubr.msk.f32.mxu0 %vm189_vm0, %v188_v0  ;;  %v28_v2 = vld [vmem:[%s242_s0] sm:$0xff]  ;;  %s191_s1 = smov [#allocation5]  }
  0x14   :  { %138 = vset.pattern.permute.xlu0 %v190_v1  ;;  %v27_v3 = vld [vmem:[#allocation2] sm:$0xff]  ;;  %129 = vmatpush3.msra.mxu0 %v28_v2  ;;  %s116_s28 = sshll.u32 %s191_s1, 4  ;;  %s117_s28 = int_to_ptr.vmem [resolvable:$true] %s116_s28 }
  0x15   :  { %v29_v4 = vld [vmem:[%s244_s2] sm:$0xff]  ;;  %131 = vmatmul.mubr.msk.f32.vlgmr.msra.gmra.mrb[0].mxu0 %vm35_vm1, %v27_v3  ;;  %s161_s29 = scalar_lea.vmem %s117_s28, 128  ;;  %p166_p9 = scmp.lt.s32.totalorder %s117_s28, %s117_s28 }
  0x16   :  { %32 = vperm.xlu0 %138, %v29_v4   ;;  %p162_p8 = scmp.ne.s32.totalorder %s117_s28, %s161_s29  ;;  %p167_p10 = scmp.lt.s32.totalorder %s161_s29, %s161_s29 }
  0x18   :  { %p168_p11 = por %p167_p10, %p166_p9 }
  0x1a   :  { %p169_p12 = pnand %p168_p11, %p162_p8 }
  0x95   :  { %v33_v5 = vpop.permute.xlu0 %32 }
  0xe8   :  { %v105_v6 = vpop.f32.mrb[0].mxu0 }
  0xe9   :  { %v106_v7 = vadd.f32 %v105_v6, %v33_v5  ;;  %v132_v8 = vpop.f32.mrb[1].mxu0 }
  0xeb   :  { %109 = vst [vmem:[#allocation5] sm:$0xff] %v106_v7 }
  0xec   :  { %172 = shalt.err (!%p169_p12)
}
  0xed   :  { %s173_s30 = scalar_lea.hbm %s245_s3, 128 }
  0xee   :  { %p174_p13 = scmp.ne.s32.totalorder %s245_s3, %s173_s30  ;;  %p177_p0 = scmp.lt.u32.totalorder %s173_s30, %s245_s3 }
  0xf0   :  { %p179_p1 = pnand %p177_p0, %p174_p13 }
  0xf2   :  { %182 = shalt.err (!%p179_p1)
}
  0xf3   :  { %119 = dma.vmem_to_hbm [thread:$0]  %s117_s28, 128, %s245_s3, [#allocation4]  }
  0xf4   :  { %185 = dma.done.wait [#allocation4], 128  }
  0xf5   :  { %186 = vsyncadd [#allocation4], 4294967168 }
  0xf6   :  { %123 = vsyncpa [#allocation3], 1 }
  0xf7   :  { %124 = vsyncpa [#allocation4], 1 }

</bundles_post_ra>
